<compile_context>
chip_gen: v7x
topology: tpu7x:2x2x1
jax: 0.10.0
libtpu: 0.0.40
codegen_flags: <defaults>
</compile_context>

<pallas_src>
import jax
import jax.numpy as jnp
from jax import lax
from jax.experimental import pallas as pl
from jax.experimental.pallas import tpu as pltpu


def _round_up(x, m):
    return ((x + m - 1) // m) * m


def qfunction_kernel(o_ref, a_ref,
                     w1o_t_ref, w1a_t_ref, b1_ref,
                     w2_t_ref, b2_ref,
                     w3_ref, b3_ref,
                     out_ref):
    cdt = w1o_t_ref.dtype  # compute dtype (f32 default, optionally bf16)

    # Activations arrive in their native dtype (f32); cast in-kernel (VPU, ~free)
    # instead of in the wrapper, which would add an extra HBM pass.
    o = o_ref[...].astype(cdt)           # (T, obs_dim)
    a = a_ref[...].astype(cdt)           # (T, act_dim)

    # Layer 1, transposed form: contract the feature axis of W^T (H1, F) with the
    # feature axis of the activations (T, F) -> (H1, T).  Batch on lanes.
    dn = (((1,), (1,)), ((), ()))
    h1 = (lax.dot_general(w1o_t_ref[...], o, dimension_numbers=dn,
                          preferred_element_type=jnp.float32)
          + lax.dot_general(w1a_t_ref[...], a, dimension_numbers=dn,
                            preferred_element_type=jnp.float32)
          + b1_ref[...])                 # (H1, 1) bias broadcasts over lanes
    h1 = jnp.maximum(h1, 0.0)            # (H1, T) f32

    # Layer 2: (H2, H1) @ (H1, T) -> (H2, T)
    h2 = (jnp.dot(w2_t_ref[...], h1.astype(cdt),
                  preferred_element_type=jnp.float32)
          + b2_ref[...])
    h2 = jnp.maximum(h2, 0.0)            # (H2, T) f32

    # Output head: (1, H2) @ (H2, T) -> (1, T).  Already lane-dense on batch.
    q = (jnp.dot(w3_ref[...], h2.astype(cdt),
                 preferred_element_type=jnp.float32)
         + b3_ref[...])                  # (1, 1) bias broadcast

    out_ref[...] = q.reshape(1, 1, -1).astype(out_ref.dtype)


def qfunction_forward(o, a, params, *, batch_tile=None,
                      compute_dtype=jnp.float32):
    """Q-network forward. o: (B, obs_dim), a: (B, act_dim) -> (B, 1) float32.

    compute_dtype=float32 matches the PyTorch module exactly; bfloat16 is an
    optional fast path (weights only — activation HBM traffic is f32 either way).
    """
    w1o, w1a, b1, w2, b2, w3, b3 = params
    B, obs_dim = o.shape
    act_dim = a.shape[1]
    H1 = w1o.shape[1]
    H2 = w2.shape[1]

    # Tile selection: batch lives on the lane axis of every intermediate, so the
    # tile is a multiple of 128.  Large tiles amortize the ~0.35us/step overhead;
    # for B > 4096 keep the step count even so v7x's two TensorCores stay balanced.
    if batch_tile is None:
        if B <= 4096:
            batch_tile = _round_up(B, 128)          # single (possibly ragged) tile
        else:
            nt = pl.cdiv(B, 4096)
            if nt % 2:
                nt += 1                              # even step count for v7x dual-TC
            batch_tile = _round_up(pl.cdiv(B, nt), 128)
    assert batch_tile % 128 == 0, "batch_tile must be a multiple of 128 (batch is on lanes)"

    num_tiles = pl.cdiv(B, batch_tile)
    # No jnp.pad: the ragged final input block is handled by Pallas; garbage rows
    # only feed padded output columns, which are sliced off below.

    # Weight prep (tiny, one-time): pre-transposed weights, column-vector biases.
    w1o_t = w1o.T.astype(compute_dtype)              # (H1, obs_dim)
    w1a_t = w1a.T.astype(compute_dtype)              # (H1, act_dim)
    w2_t = w2.T.astype(compute_dtype)                # (H2, H1)
    w3_row = w3.reshape(1, H2).astype(compute_dtype)  # (1, H2)
    b1c = b1.reshape(H1, 1).astype(jnp.float32)
    b2c = b2.reshape(H2, 1).astype(jnp.float32)
    b3c = b3.reshape(1, 1).astype(jnp.float32)

    def rep(shape):
        # Full-array block, constant index map -> resident in VMEM, no re-DMA.
        return pl.BlockSpec(shape, lambda i, _s=len(shape): (0,) * _s)

    out = pl.pallas_call(
        qfunction_kernel,
        out_shape=jax.ShapeDtypeStruct((num_tiles, 1, batch_tile), jnp.float32),
        grid=(num_tiles,),
        in_specs=[
            pl.BlockSpec((batch_tile, obs_dim), lambda i: (i, 0)),
            pl.BlockSpec((batch_tile, act_dim), lambda i: (i, 0)),
            rep((H1, obs_dim)),
            rep((H1, act_dim)),
            rep((H1, 1)),
            rep((H2, H1)),
            rep((H2, 1)),
            rep((1, H2)),
            rep((1, 1)),
        ],
        out_specs=pl.BlockSpec((1, 1, batch_tile), lambda i: (i, 0, 0)),
        compiler_params=pltpu.CompilerParams(
            dimension_semantics=("parallel",),
            vmem_limit_bytes=32 * 1024 * 1024),
    )(o, a, w1o_t, w1a_t, b1c, w2_t, b2c, w3_row, b3c)

    # (num_tiles, 1, batch_tile) lane-dense slab -> (B, 1), dropping ragged tail.
    return out.reshape(-1, 1)[:B]


def init_qfunction_params(key, obs_dim, act_dim, hidden=(32, 32)):
    """Deterministic init mirroring init_weights_: xavier_uniform weights, uniform(0,1) biases."""
    in_dim = obs_dim + act_dim
    dims = [in_dim, hidden[0], hidden[1], 1]
    keys = jax.random.split(key, 2 * (len(dims) - 1))

    def xavier(k, fan_in, fan_out):
        bound = jnp.sqrt(6.0 / (fan_in + fan_out))
        return jax.random.uniform(k, (fan_in, fan_out), jnp.float32, -bound, bound)

    w1 = xavier(keys[0], dims[0], dims[1])
    b1 = jax.random.uniform(keys[1], (1, dims[1]), jnp.float32, 0.0, 1.0)
    w2 = xavier(keys[2], dims[1], dims[2])
    b2 = jax.random.uniform(keys[3], (1, dims[2]), jnp.float32, 0.0, 1.0)
    w3 = xavier(keys[4], dims[2], dims[3])
    b3 = jax.random.uniform(keys[5], (1, dims[3]), jnp.float32, 0.0, 1.0)

    # Split W1 so the concat([o, a]) can be folded into two matmuls inside the kernel.
    w1o = w1[:obs_dim]
    w1a = w1[obs_dim:]
    return (w1o, w1a, b1, w2, b2, w3, b3)


def qfunction_reference(o, a, params, compute_dtype=jnp.float32):
    w1o, w1a, b1, w2, b2, w3, b3 = params
    x = jnp.concatenate([o, a], axis=-1).astype(compute_dtype)
    w1 = jnp.concatenate([w1o, w1a], axis=0).astype(compute_dtype)
    h1 = jnp.maximum(jnp.dot(x, w1, preferred_element_type=jnp.float32)
                     + b1.astype(jnp.float32), 0.0)
    h2 = jnp.maximum(jnp.dot(h1.astype(compute_dtype), w2.astype(compute_dtype),
                             preferred_element_type=jnp.float32)
                     + b2.astype(jnp.float32), 0.0)
    return (jnp.dot(h2.astype(compute_dtype), w3.astype(compute_dtype),
                    preferred_element_type=jnp.float32)
            + b3.astype(jnp.float32))


if __name__ == "__main__":
    # TODO(synk): optimizer construction in __init__ is training-time machinery; not part of forward.
    obs_dim, act_dim = 24, 8

    key = jax.random.PRNGKey(0)
    k_o, k_a, k_p = jax.random.split(key, 3)
    params = init_qfunction_params(k_p, obs_dim, act_dim, hidden=(32, 32))

    # Small batch: single ragged tile (B=16 < 128).  Exact f32 check.
    B = 16
    o = jax.random.normal(k_o, (B, obs_dim), jnp.float32)
    a = jax.random.normal(k_a, (B, act_dim), jnp.float32)
    q = jax.block_until_ready(qfunction_forward(o, a, params))
    q_ref = qfunction_reference(o, a, params)
    assert q.shape == (B, 1)
    assert jnp.allclose(q, q_ref, atol=1e-5, rtol=1e-5), "f32 mismatch vs JAX reference"

    # Multi-tile + ragged last block (B=300, batch_tile=128 -> 3 steps).
    B2 = 300
    o2 = jax.random.normal(jax.random.PRNGKey(1), (B2, obs_dim), jnp.float32)
    a2 = jax.random.normal(jax.random.PRNGKey(2), (B2, act_dim), jnp.float32)
    q2 = jax.block_until_ready(qfunction_forward(o2, a2, params, batch_tile=128))
    q2_ref = qfunction_reference(o2, a2, params)
    assert q2.shape == (B2, 1)
    assert jnp.allclose(q2, q2_ref, atol=1e-5, rtol=1e-5), "multi-tile f32 mismatch"

    # Optional bf16 fast path, checked against a matching bf16 reference.
    q_bf16 = jax.block_until_ready(
        qfunction_forward(o, a, params, compute_dtype=jnp.bfloat16))
    q_ref_bf16 = qfunction_reference(o, a, params, compute_dtype=jnp.bfloat16)
    assert jnp.allclose(q_bf16, q_ref_bf16, atol=1e-2, rtol=1e-2), "bf16 mismatch vs JAX reference"

    print("KERNEL_OK")
</pallas_src>

<mosaic_0001>
module attributes {stable_mosaic.version = 11 : i64} {
  func.func @qfunction_kernel(%arg0: i32, %arg1: memref<128x24xf32, #tpu.memory_space<vmem>>, %arg2: memref<128x8xf32, #tpu.memory_space<vmem>>, %arg3: memref<32x24xf32, #tpu.memory_space<vmem>>, %arg4: memref<32x8xf32, #tpu.memory_space<vmem>>, %arg5: memref<32x1xf32, #tpu.memory_space<vmem>>, %arg6: memref<32x32xf32, #tpu.memory_space<vmem>>, %arg7: memref<32x1xf32, #tpu.memory_space<vmem>>, %arg8: memref<1x32xf32, #tpu.memory_space<vmem>>, %arg9: memref<1x1xf32, #tpu.memory_space<vmem>>, %arg10: memref<1x1x128xf32, #tpu.memory_space<vmem>>) attributes {dimension_semantics = [#tpu.dimension_semantics<parallel>], iteration_bounds = array<i64: 1>, scalar_prefetch = 0 : i64, scratch_operands = 0 : i64, tpu.core_type = #tpu.core_type<tc>, window_params = [{transform_indices = @transform_0, window_bounds = array<i64: 128, 24>}, {transform_indices = @transform_1, window_bounds = array<i64: 128, 8>}, {pipeline_mode = #tpu.pipeline_mode<synchronous>, transform_indices = @transform_2, window_bounds = array<i64: 32, 24>}, {pipeline_mode = #tpu.pipeline_mode<synchronous>, transform_indices = @transform_3, window_bounds = array<i64: 32, 8>}, {pipeline_mode = #tpu.pipeline_mode<synchronous>, transform_indices = @transform_4, window_bounds = array<i64: 32, 1>}, {pipeline_mode = #tpu.pipeline_mode<synchronous>, transform_indices = @transform_5, window_bounds = array<i64: 32, 32>}, {pipeline_mode = #tpu.pipeline_mode<synchronous>, transform_indices = @transform_6, window_bounds = array<i64: 32, 1>}, {pipeline_mode = #tpu.pipeline_mode<synchronous>, transform_indices = @transform_7, window_bounds = array<i64: 1, 32>}, {pipeline_mode = #tpu.pipeline_mode<synchronous>, transform_indices = @transform_8, window_bounds = array<i64: 1, 1>}, {transform_indices = @transform_9, window_bounds = array<i64: 1, 1, 128>}]} {
    %c0 = arith.constant 0 : index
    %c0_0 = arith.constant 0 : index
    %0 = vector.load %arg1[%c0, %c0_0] : memref<128x24xf32, #tpu.memory_space<vmem>>, vector<128x24xf32>
    %c0_1 = arith.constant 0 : index
    %c0_2 = arith.constant 0 : index
    %1 = vector.load %arg2[%c0_1, %c0_2] : memref<128x8xf32, #tpu.memory_space<vmem>>, vector<128x8xf32>
    %c0_3 = arith.constant 0 : index
    %c0_4 = arith.constant 0 : index
    %2 = vector.load %arg3[%c0_3, %c0_4] : memref<32x24xf32, #tpu.memory_space<vmem>>, vector<32x24xf32>
    %cst = arith.constant dense<0.000000e+00> : vector<32x128xf32>
    %3 = tpu.matmul %2, %0, %cst {dimension_numbers = #tpu.dot_dimension_numbers<[1], [1], [0], [0], [0, 0, 1, 0], [], []>} : vector<32x24xf32>, vector<128x24xf32>, vector<32x128xf32> -> vector<32x128xf32>
    %c0_5 = arith.constant 0 : index
    %c0_6 = arith.constant 0 : index
    %4 = vector.load %arg4[%c0_5, %c0_6] : memref<32x8xf32, #tpu.memory_space<vmem>>, vector<32x8xf32>
    %cst_7 = arith.constant dense<0.000000e+00> : vector<32x128xf32>
    %5 = tpu.matmul %4, %1, %cst_7 {dimension_numbers = #tpu.dot_dimension_numbers<[1], [1], [0], [0], [0, 0, 1, 0], [], []>} : vector<32x8xf32>, vector<128x8xf32>, vector<32x128xf32> -> vector<32x128xf32>
    %6 = arith.addf %3, %5 : vector<32x128xf32>
    %c0_8 = arith.constant 0 : index
    %c0_9 = arith.constant 0 : index
    %7 = vector.load %arg5[%c0_8, %c0_9] : memref<32x1xf32, #tpu.memory_space<vmem>>, vector<32x1xf32>
    %8 = vector.broadcast %7 : vector<32x1xf32> to vector<32x128xf32>
    %9 = arith.addf %6, %8 : vector<32x128xf32>
    %cst_10 = arith.constant 0.000000e+00 : f32
    %10 = vector.broadcast %cst_10 : f32 to vector<32x128xf32>
    %11 = arith.maximumf %9, %10 : vector<32x128xf32>
    %c0_11 = arith.constant 0 : index
    %c0_12 = arith.constant 0 : index
    %12 = vector.load %arg6[%c0_11, %c0_12] : memref<32x32xf32, #tpu.memory_space<vmem>>, vector<32x32xf32>
    %cst_13 = arith.constant dense<0.000000e+00> : vector<32x128xf32>
    %13 = tpu.matmul %12, %11, %cst_13 {dimension_numbers = #tpu.dot_dimension_numbers<[1], [0], [0], [1], [0, 0, 1, 1], [], []>} : vector<32x32xf32>, vector<32x128xf32>, vector<32x128xf32> -> vector<32x128xf32>
    %c0_14 = arith.constant 0 : index
    %c0_15 = arith.constant 0 : index
    %14 = vector.load %arg7[%c0_14, %c0_15] : memref<32x1xf32, #tpu.memory_space<vmem>>, vector<32x1xf32>
    %15 = vector.broadcast %14 : vector<32x1xf32> to vector<32x128xf32>
    %16 = arith.addf %13, %15 : vector<32x128xf32>
    %cst_16 = arith.constant 0.000000e+00 : f32
    %17 = vector.broadcast %cst_16 : f32 to vector<32x128xf32>
    %18 = arith.maximumf %16, %17 : vector<32x128xf32>
    %c0_17 = arith.constant 0 : index
    %c0_18 = arith.constant 0 : index
    %19 = vector.load %arg8[%c0_17, %c0_18] : memref<1x32xf32, #tpu.memory_space<vmem>>, vector<1x32xf32>
    %cst_19 = arith.constant dense<0.000000e+00> : vector<1x128xf32>
    %20 = tpu.matmul %19, %18, %cst_19 {dimension_numbers = #tpu.dot_dimension_numbers<[1], [0], [0], [1], [0, 0, 1, 1], [], []>} : vector<1x32xf32>, vector<32x128xf32>, vector<1x128xf32> -> vector<1x128xf32>
    %c0_20 = arith.constant 0 : index
    %c0_21 = arith.constant 0 : index
    %21 = vector.load %arg9[%c0_20, %c0_21] : memref<1x1xf32, #tpu.memory_space<vmem>>, vector<1x1xf32>
    %22 = vector.broadcast %21 : vector<1x1xf32> to vector<1x128xf32>
    %23 = arith.addf %20, %22 : vector<1x128xf32>
    %24 = vector.shape_cast %23 : vector<1x128xf32> to vector<1x1x128xf32>
    %c0_22 = arith.constant 0 : index
    %c0_23 = arith.constant 0 : index
    %c0_24 = arith.constant 0 : index
    %25 = vector.load %arg10[%c0_22, %c0_23, %c0_24] : memref<1x1x128xf32, #tpu.memory_space<vmem>>, vector<1x1x128xf32>
    tpu.vector_store %arg10[%c0_22, %c0_23, %c0_24], %24 {strides = array<i32>} : memref<1x1x128xf32, #tpu.memory_space<vmem>>, vector<1x1x128xf32>,
    return
  }
  func.func @transform_0(%arg0: i32) -> (i32, i32) {
    %c0_i32 = arith.constant 0 : i32
    %c0_i32_0 = arith.constant 0 : i32
    return %arg0, %c0_i32 : i32, i32
  }
  func.func @transform_1(%arg0: i32) -> (i32, i32) {
    %c0_i32 = arith.constant 0 : i32
    %c0_i32_0 = arith.constant 0 : i32
    return %arg0, %c0_i32 : i32, i32
  }
  func.func @transform_2(%arg0: i32) -> (i32, i32) {
    %c0_i32 = arith.constant 0 : i32
    %c0_i32_0 = arith.constant 0 : i32
    %c0_i32_1 = arith.constant 0 : i32
    return %c0_i32, %c0_i32_0 : i32, i32
  }
  func.func @transform_3(%arg0: i32) -> (i32, i32) {
    %c0_i32 = arith.constant 0 : i32
    %c0_i32_0 = arith.constant 0 : i32
    %c0_i32_1 = arith.constant 0 : i32
    return %c0_i32, %c0_i32_0 : i32, i32
  }
  func.func @transform_4(%arg0: i32) -> (i32, i32) {
    %c0_i32 = arith.constant 0 : i32
    %c0_i32_0 = arith.constant 0 : i32
    %c0_i32_1 = arith.constant 0 : i32
    return %c0_i32, %c0_i32_0 : i32, i32
  }
  func.func @transform_5(%arg0: i32) -> (i32, i32) {
    %c0_i32 = arith.constant 0 : i32
    %c0_i32_0 = arith.constant 0 : i32
    %c0_i32_1 = arith.constant 0 : i32
    return %c0_i32, %c0_i32_0 : i32, i32
  }
  func.func @transform_6(%arg0: i32) -> (i32, i32) {
    %c0_i32 = arith.constant 0 : i32
    %c0_i32_0 = arith.constant 0 : i32
    %c0_i32_1 = arith.constant 0 : i32
    return %c0_i32, %c0_i32_0 : i32, i32
  }
  func.func @transform_7(%arg0: i32) -> (i32, i32) {
    %c0_i32 = arith.constant 0 : i32
    %c0_i32_0 = arith.constant 0 : i32
    %c0_i32_1 = arith.constant 0 : i32
    return %c0_i32, %c0_i32_0 : i32, i32
  }
  func.func @transform_8(%arg0: i32) -> (i32, i32) {
    %c0_i32 = arith.constant 0 : i32
    %c0_i32_0 = arith.constant 0 : i32
    %c0_i32_1 = arith.constant 0 : i32
    return %c0_i32, %c0_i32_0 : i32, i32
  }
  func.func @transform_9(%arg0: i32) -> (i32, i32, i32) {
    %c0_i32 = arith.constant 0 : i32
    %c0_i32_0 = arith.constant 0 : i32
    %c0_i32_1 = arith.constant 0 : i32
    return %arg0, %c0_i32, %c0_i32_0 : i32, i32, i32
  }
}

</mosaic_0001>

<bundles_post_ra>
// kernel: tpu_custom_call.1
= control target key start
LH: loop header
LB: loop body
LE: loop exit
PB: predicated region body
PF: predicated region fallthrough
CT: control target
= control target key end

     0   :  { %s1290_s0 = inlined_call_operand.vmem [shape: f32[16,24], index: 0, kind: input, shape index: {}]   ;;  %s1291_s1 = inlined_call_operand.vmem [shape: f32[16,8], index: 1, kind: input, shape index: {}]   ;;  %s1292_s2 = inlined_call_operand.vmem [shape: f32[32,24], index: 2, kind: input, shape index: {}]   ;;  %s1293_s3 = inlined_call_operand.vmem [shape: f32[32,8], index: 3, kind: input, shape index: {}]   ;;  %s1294_s4 = inlined_call_operand.vmem [shape: f32[32,1], index: 4, kind: input, shape index: {}]   ;;  %s1295_s5 = inlined_call_operand.vmem [shape: f32[32,32], index: 5, kind: input, shape index: {}]   ;;  %s1296_s6 = inlined_call_operand.vmem [shape: f32[32,1], index: 6, kind: input, shape index: {}]   ;;  %s1297_s7 = inlined_call_operand.vmem [shape: f32[1,32], index: 7, kind: input, shape index: {}]   ;;  %s1298_s8 = inlined_call_operand.<no memory space> [shape: f32[1,1], index: 8, kind: input, shape index: {}]   ;;  %s1299_s9 = inlined_call_operand.hbm [shape: f32[1,1,128], index: 9, kind: output, shape index: {}]  }
   0x1   :  { %v14_v0 = vstv %s1298_s8 }
   0x2   :  { %15 = vst [vmem:[#allocation2] sm:$0x1] %v14_v0 }
   0x3   :  { %v51_v1 = vld [vmem:[%s1291_s1] sm:$0xff]  ;;  %v52_v2 = vld [vmem:[%s1291_s1 + $0x8] sm:$0xff]  ;;  %vm75_vm0 = vcmask 64512   ;;  %vm221_vm1 = vcmask 195584   ;;  %v53_v7 = vld [vmem:[%s1291_s1 + $0x10] sm:$0xff]  ;;  %v972_v8 = vmov 0  }
   0x4   :  { %v35_v3 = vld [vmem:[%s1290_s0] sm:$0xff]  ;;  %v827_v4 = vpack.c.bf16 %v52_v2, %v51_v1  ;;  %vm1041_vm2 = vmpackc.low %vm75_vm0, %vm75_vm0  ;;  %v36_v6 = vld [vmem:[%s1290_s0 + $0x8] sm:$0xff]  ;;  %946 = vset.pattern.permute.xlu0 %v972_v8  ;;  %947 = vset.pattern.permute.xlu1 %v972_v8 }
   0x5   :  { %v875_v9 = vpack.c.bf16 %v36_v6, %v35_v3  ;;  %vm1053_vm3 = vmpackc.low %vm221_vm1, %vm221_vm1  ;;  %v54_v11 = vld [vmem:[%s1291_s1 + $0x18] sm:$0xff]  ;;  %v37_v12 = vld [vmem:[%s1290_s0 + $0x10] sm:$0xff] }
   0x6   :  { %829 = vmatprep.subr.msk.bf16.mxu1 %vm1041_vm2, %v827_v4  ;;  %v833_v13 = vpack.c.bf16 %v54_v11, %v53_v7  ;;  %v38_v14 = vld [vmem:[%s1290_s0 + $0x18] sm:$0xff]  ;;  %v55_v16 = vld [vmem:[%s1291_s1 + $0x20] sm:$0xff]  ;;  %v56_v17 = vld [vmem:[%s1291_s1 + $0x28] sm:$0xff] }
   0x7   :  { %877 = vmatprep.subr.msk.bf16.mxu0 %vm1053_vm3, %v875_v9  ;;  %832 = vmatpush3.bf16.xpose.msk.msra.mxu1 %vm1041_vm2, %v827_v4  ;;  %v881_v15 = vpack.c.bf16 %v38_v14, %v37_v12  ;;  %v39_v18 = vld [vmem:[%s1290_s0 + $0x20] sm:$0xff]  ;;  %v40_v19 = vld [vmem:[%s1290_s0 + $0x28] sm:$0xff]  ;;  %v839_v20 = vpack.c.bf16 %v56_v17, %v55_v16  ;;  %v57_v24 = vld [vmem:[%s1291_s1 + $0x30] sm:$0xff] }
   0x8   :  { %880 = vmatpush3.bf16.xpose.msk.msra.mxu0 %vm1053_vm3, %v875_v9  ;;  %835 = vmatprep.subr.msk.bf16.mxu1 %vm1041_vm2, %v833_v13  ;;  %v887_v21 = vpack.c.bf16 %v40_v19, %v39_v18  ;;  %v71_v22 = vld [vmem:[%s1293_s3] sm:$0xff]  ;;  %v58_v25 = vld [vmem:[%s1291_s1 + $0x38] sm:$0xff]  ;;  %v369_v27 = vld [vmem:[%s1294_s4 + $0x10] sm:$0xff] }
   0x9   :  { %883 = vmatprep.subr.msk.bf16.mxu0 %vm1053_vm3, %v881_v15  ;;  %v67_v23 = vld [vmem:[%s1292_s2] sm:$0xff]  ;;  %758 = vmatprep.mubr.msk.f32.mxu1 %vm75_vm0, %v71_v22  ;;  %v41_v28 = vld [vmem:[%s1290_s0 + $0x30] sm:$0xff]  ;;  %v42_v29 = vld [vmem:[%s1290_s0 + $0x38] sm:$0xff]  ;;  %v845_v32 = vpack.c.bf16 %v58_v25, %v57_v24 }
   0xa   :  { %796 = vmatprep.mubr.msk.f32.mxu0 %vm221_vm1, %v67_v23  ;;  %v367_v26 = vld [vmem:[%s1294_s4] sm:$0xff]  ;;  %383 = vperm.xlu1 %947, %v369_v27   ;;  %v368_v30 = vld [vmem:[%s1294_s4 + $0x8] sm:$0xff]  ;;  %v370_v31 = vld [vmem:[%s1294_s4 + $0x18] sm:$0xff] }
   0xb   :  { %373 = vperm.xlu0 %946, %v367_v26  }
   0xf   :  { %838 = vmatpush3.bf16.xpose.msk.msra.mxu1 %vm1041_vm2, %v833_v13 }
  0x10   :  { %886 = vmatpush3.bf16.xpose.msk.msra.mxu0 %vm1053_vm3, %v881_v15  ;;  %841 = vmatprep.subr.msk.bf16.mxu1 %vm1041_vm2, %v839_v20 }
  0x11   :  { %889 = vmatprep.subr.msk.bf16.mxu0 %vm1053_vm3, %v887_v21 }
  0x12   :  { %16 = vsyncpa [#allocation4], 0  ;;  %v893_v33 = vpack.c.bf16 %v42_v29, %v41_v28  ;;  %378 = vperm.xlu0 %946, %v368_v30   ;;  %388 = vperm.xlu1 %947, %v370_v31   ;;  %v403_v34 = vld [vmem:[%s1296_s6] sm:$0xff]  ;;  %v404_v35 = vld [vmem:[%s1296_s6 + $0x8] sm:$0xff]  ;;  %vm427_vm4 = vcmask 261120   ;;  %vm974_vm5 = vmmov 0  }
  0x13   :  { %v59_v36 = vld [vmem:[%s1291_s1 + $0x40] sm:$0xff]  ;;  %v60_v37 = vld [vmem:[%s1291_s1 + $0x48] sm:$0xff]  ;;  %v405_v40 = vld [vmem:[%s1296_s6 + $0x10] sm:$0xff]  ;;  %s976_s18 = smov [#allocation3]  }
  0x14   :  { %v43_v38 = vld [vmem:[%s1290_s0 + $0x40] sm:$0xff]  ;;  %v44_v39 = vld [vmem:[%s1290_s0 + $0x48] sm:$0xff]  ;;  %v406_v41 = vld [vmem:[%s1296_s6 + $0x18] sm:$0xff]  ;;  %v851_v42 = vpack.c.bf16 %v60_v37, %v59_v36  ;;  %v975_v36 = vmov 0.0   ;;  %s620_s19 = sshll.u32 %s976_s18, 4  ;;  %s621_s19 = int_to_ptr.vmem [resolvable:$true] %s620_s19 }
  0x15   :  { %v899_v43 = vpack.c.bf16 %v44_v39, %v43_v38  ;;  %v530_v44 = vld [vmem:[#allocation2] sm:$0x1]  ;;  %v61_v45 = vld [vmem:[%s1291_s1 + $0x50] sm:$0xff]  ;;  %v62_v46 = vld [vmem:[%s1291_s1 + $0x58] sm:$0xff]  ;;  %s948_s20 = scalar_lea.vmem %s621_s19, 16  ;;  %s952_s21 = scalar_lea.vmem %s621_s19, 32 }
  0x16   :  { %409 = vperm.xlu0 %946, %v403_v34   ;;  %414 = vperm.xlu1 %947, %v404_v35   ;;  %v45_v47 = vld [vmem:[%s1290_s0 + $0x50] sm:$0xff]  ;;  %v46_v48 = vld [vmem:[%s1290_s0 + $0x58] sm:$0xff]  ;;  %v857_v49 = vpack.c.bf16 %v62_v46, %v61_v45  ;;  %v63_v51 = vld [vmem:[%s1291_s1 + $0x60] sm:$0xff]  ;;  %v973_v35 = vmov 0.0|0.0   ;;  %p949_p0 = scmp.ne.s32.totalorder %s621_s19, %s948_s20  ;;  %p953_p1 = scmp.lt.s32.totalorder %s621_s19, %s621_s19 }
  0x17   :  { %844 = vmatpush3.bf16.xpose.msk.msra.mxu1 %vm1041_vm2, %v839_v20  ;;  %v905_v50 = vpack.c.bf16 %v46_v48, %v45_v47  ;;  %v64_v52 = vld [vmem:[%s1291_s1 + $0x68] sm:$0xff]  ;;  %v47_v53 = vld [vmem:[%s1290_s0 + $0x60] sm:$0xff]  ;;  %v65_v57 = vld [vmem:[%s1291_s1 + $0x70] sm:$0xff]  ;;  %p954_p2 = scmp.lt.s32.totalorder %s952_s21, %s948_s20 }
  0x18   :  { %892 = vmatpush3.bf16.xpose.msk.msra.mxu0 %vm1053_vm3, %v887_v21  ;;  %847 = vmatprep.subr.msk.bf16.mxu1 %vm1041_vm2, %v845_v32  ;;  %v48_v54 = vld [vmem:[%s1290_s0 + $0x68] sm:$0xff]  ;;  %v863_v55 = vpack.c.bf16 %v64_v52, %v63_v51  ;;  %v66_v58 = vld [vmem:[%s1291_s1 + $0x78] sm:$0xff]  ;;  %v49_v59 = vld [vmem:[%s1290_s0 + $0x70] sm:$0xff] }
  0x19   :  { %895 = vmatprep.subr.msk.bf16.mxu0 %vm1053_vm3, %v893_v33  ;;  %v911_v56 = vpack.c.bf16 %v48_v54, %v47_v53  ;;  %v50_v60 = vld [vmem:[%s1290_s0 + $0x78] sm:$0xff]  ;;  %v869_v61 = vpack.c.bf16 %v66_v58, %v65_v57  ;;  %v72_v63 = vld [vmem:[%s1293_s3 + $0x8] sm:$0xff]  ;;  %v73_v1 = vld [vmem:[%s1293_s3 + $0x10] sm:$0xff]  ;;  %p955_p3 = por %p954_p2, %p953_p1 }
  0x1a   :  { %419 = vperm.xlu0 %946, %v405_v40   ;;  %424 = vperm.xlu1 %947, %v406_v41   ;;  %v917_v62 = vpack.c.bf16 %v50_v60, %v49_v59  ;;  %v68_v0 = vld [vmem:[%s1292_s2 + $0x8] sm:$0xff]  ;;  %v69_v2 = vld [vmem:[%s1292_s2 + $0x10] sm:$0xff]  ;;  %v74_v3 = vld [vmem:[%s1293_s3 + $0x18] sm:$0xff] }
  0x1b   :  { %v70_v4 = vld [vmem:[%s1292_s2 + $0x18] sm:$0xff]  ;;  %v399_v5 = vld [vmem:[%s1295_s5] sm:$0xff]  ;;  %p956_p4 = pnand %p955_p3, %p949_p0 }
  0x1c   :  { %v402_v34 = vld [vmem:[%s1295_s5 + $0x18] sm:$0xff] }
  0x1e   :  { %533 = vperm.xlu0 %946, %v530_v44  }
  0x1f   :  { %850 = vmatpush3.bf16.xpose.msk.msra.mxu1 %vm1041_vm2, %v845_v32  ;;  %v400_v32 = vld [vmem:[%s1295_s5 + $0x8] sm:$0xff] }
  0x20   :  { %898 = vmatpush3.bf16.xpose.msk.msra.mxu0 %vm1053_vm3, %v893_v33  ;;  %853 = vmatprep.subr.msk.bf16.mxu1 %vm1041_vm2, %v851_v42  ;;  %v401_v33 = vld [vmem:[%s1295_s5 + $0x10] sm:$0xff] }
  0x21   :  { %901 = vmatprep.subr.msk.bf16.mxu0 %vm1053_vm3, %v899_v43 }
  0x27   :  { %856 = vmatpush3.bf16.xpose.msk.msra.mxu1 %vm1041_vm2, %v851_v42 }
  0x28   :  { %904 = vmatpush3.bf16.xpose.msk.msra.mxu0 %vm1053_vm3, %v899_v43  ;;  %859 = vmatprep.subr.msk.bf16.mxu1 %vm1041_vm2, %v857_v49 }
  0x29   :  { %907 = vmatprep.subr.msk.bf16.mxu0 %vm1053_vm3, %v905_v50 }
  0x2f   :  { %862 = vmatpush3.bf16.xpose.msk.msra.mxu1 %vm1041_vm2, %v857_v49 }
  0x30   :  { %910 = vmatpush3.bf16.xpose.msk.msra.mxu0 %vm1053_vm3, %v905_v50  ;;  %865 = vmatprep.subr.msk.bf16.mxu1 %vm1041_vm2, %v863_v55 }
  0x31   :  { %913 = vmatprep.subr.msk.bf16.mxu0 %vm1053_vm3, %v911_v56 }
  0x37   :  { %868 = vmatpush3.bf16.xpose.msk.msra.mxu1 %vm1041_vm2, %v863_v55  ;;  %v529_v55 = vld [vmem:[%s1297_s7] sm:$0x1] }
  0x38   :  { %916 = vmatpush3.bf16.xpose.msk.msra.mxu0 %vm1053_vm3, %v911_v56  ;;  %871 = vmatprep.subr.msk.bf16.mxu1 %vm1041_vm2, %v869_v61  ;;  %v536_v56 = vlaneseq }
  0x39   :  { %919 = vmatprep.subr.msk.bf16.mxu0 %vm1053_vm3, %v917_v62 }
  0x3a   :  { %v537_v57 = vshrl.u32 %v536_v56, 7 }
  0x3c   :  { %v538_v58 = vsub.s32 0, %v537_v57 }
  0x3f   :  { %874 = vmatpush3.bf16.xpose.msk.msra.mxu1 %vm1041_vm2, %v869_v61 }
  0x40   :  { %922 = vmatpush3.bf16.xpose.msk.msra.mxu0 %vm1053_vm3, %v917_v62  ;;  %931 = vmatprep.subr.bf16.mxu1 %v973_v35 }
  0x46   :  { %759 = vmatmul.mubr.msk.f32.vlgmr.msra.gmra.mrb[0].mxu1 %vm75_vm0, %v72_v63 }
  0x47   :  { %797 = vmatmul.mubr.msk.f32.vlgmr.msra.gmra.mrb[0].mxu0 %vm221_vm1, %v68_v0  ;;  %761 = vmatprep.mubr.msk.f32.mxu1 %vm75_vm0, %v73_v1 }
  0x48   :  { %799 = vmatprep.mubr.msk.f32.mxu0 %vm221_vm1, %v69_v2 }
  0x4a   :  { %762 = vmatmul.mubr.msk.f32.gmra.mrb[2].mxu1 %vm75_vm0, %v74_v3 }
  0x4b   :  { %800 = vmatmul.mubr.msk.f32.gmra.mrb[2].mxu0 %vm221_vm1, %v70_v4  ;;  %824 = vmatprep.mubr.msk.f32.mxu1 %vm974_vm5, %v975_v36 }
  0x4c   :  { %810 = vmatprep.mubr.msk.f32.mxu0 %vm427_vm4, %v399_v5 }
  0x89   :  { %v384_v7 = vpop.permute.xlu1 %383 }
  0x8a   :  { %v374_v6 = vpop.permute.xlu0 %373 }
  0x91   :  { %v379_v13 = vpop.permute.xlu0 %378  ;;  %v389_v23 = vpop.permute.xlu1 %388 }
  0x95   :  { %v415_v37 = vpop.permute.xlu1 %414  ;;  %v410_v38 = vpop.permute.xlu0 %409 }
  0x99   :  { %v425_v44 = vpop.permute.xlu1 %424  ;;  %v420_v47 = vpop.permute.xlu0 %419 }
  0x9d   :  { %v534_v59 = vpop.permute.xlu0 %533 }
  0x9e   :  { %v539_v60 = vrot.slane %v534_v59, %v538_v58 }
 0x119   :  { %v760_v8 = vpop.f32.mrb[0].mxu1 }
 0x11a   :  { %v798_v9 = vpop.f32.mrb[0].mxu0  ;;  %v202_v10 = vpop.f32.mrb[1].mxu1 }
 0x11b   :  { %v354_v11 = vadd.f32 %v798_v9, %v760_v8  ;;  %v348_v12 = vpop.f32.mrb[1].mxu0 }
 0x11c   :  { %v349_v14 = vadd.f32 %v348_v12, %v202_v10 }
 0x11d   :  { %v392_v15 = vadd.f32 %v379_v13, %v354_v11  ;;  %v763_v16 = vpop.f32.mrb[2].mxu1 }
 0x11e   :  { %v391_v17 = vadd.f32 %v374_v6, %v349_v14  ;;  %v801_v18 = vpop.f32.mrb[2].mxu0  ;;  %v212_v19 = vpop.f32.mrb[3].mxu1 }
 0x11f   :  { %v396_v20 = vmax.f32 %v392_v15, 0.0  ;;  %v364_v21 = vadd.f32 %v801_v18, %v763_v16  ;;  %v358_v22 = vpop.f32.mrb[3].mxu0 }
 0x120   :  { %v395_v24 = vmax.f32 %v391_v17, 0.0  ;;  %v359_v25 = vadd.f32 %v358_v22, %v212_v19 }
 0x121   :  { %v394_v26 = vadd.f32 %v389_v23, %v364_v21 }
 0x122   :  { %v393_v27 = vadd.f32 %v384_v7, %v359_v25  ;;  %v923_v28 = vpack.c.bf16 %v396_v20, %v395_v24 }
 0x123   :  { %v398_v29 = vmax.f32 %v394_v26, 0.0 }
 0x124   :  { %v397_v30 = vmax.f32 %v393_v27, 0.0  ;;  %924 = vmatprep.subr.bf16.mxu0 %v923_v28 }
 0x125   :  { %926 = vmatpush3.bf16.msra.mxu0 %v923_v28 }
 0x126   :  { %v927_v31 = vpack.c.bf16 %v398_v29, %v397_v30 }
 0x128   :  { %928 = vmatprep.subr.bf16.mxu0 %v927_v31 }
 0x129   :  { %930 = vmatpush3.bf16.msra.mxu0 %v927_v31 }
 0x12c   :  { %811 = vmatmul.mubr.msk.f32.vlgmr.msra.gmra.mrb[4].mxu0 %vm427_vm4, %v400_v32 }
 0x12d   :  { %813 = vmatprep.mubr.msk.f32.mxu0 %vm427_vm4, %v401_v33 }
 0x130   :  { %814 = vmatmul.mubr.msk.f32.gmra.mrb[6].mxu0 %vm427_vm4, %v402_v34 }
 0x1ff   :  { %v812_v39 = vpop.f32.mrb[4].mxu0 }
 0x200   :  { %v512_v40 = vadd.f32 %v812_v39, %v415_v37  ;;  %v506_v41 = vpop.f32.mrb[5].mxu0 }
 0x201   :  { %v507_v42 = vadd.f32 %v506_v41, %v410_v38 }
 0x202   :  { %v526_v43 = vmax.f32 %v512_v40, 0.0 }
 0x203   :  { %v525_v45 = vmax.f32 %v507_v42, 0.0  ;;  %v815_v46 = vpop.f32.mrb[6].mxu0 }
 0x204   :  { %v522_v48 = vadd.f32 %v815_v46, %v425_v44  ;;  %v516_v49 = vpop.f32.mrb[7].mxu0 }
 0x205   :  { %v932_v50 = vpack.c.bf16 %v526_v43, %v525_v45  ;;  %v517_v51 = vadd.f32 %v516_v49, %v420_v47 }
 0x206   :  { %v528_v52 = vmax.f32 %v522_v48, 0.0 }
 0x207   :  { %v527_v53 = vmax.f32 %v517_v51, 0.0  ;;  %933 = vmatpush3.bf16.msra.mxu1 %v932_v50 }
 0x208   :  { %934 = vmatprep.subr.bf16.mxu1 %v973_v35 }
 0x209   :  { %v935_v54 = vpack.c.bf16 %v528_v52, %v527_v53 }
 0x20b   :  { %936 = vmatpush3.bf16.msra.mxu1 %v935_v54 }
 0x20e   :  { %825 = vmatmul.mubr.msk.f32.vlgmr.msra.gmra.mrb[4].mxu1 %vm427_vm4, %v529_v55 }
 0x2e1   :  { %v609_v61 = vpop.f32.mrb[4].mxu1 }
 0x2e2   :  { %v610_v62 = vadd.f32 %v609_v61, %v539_v60  ;;  %v826_v63 = vpop.f32.mrb[5].mxu1 }
 0x2e4   :  { %613 = vst [vmem:[#allocation3] sm:$0x1] %v610_v62 }
 0x2e5   :  { %959 = shalt.err (!%p956_p4)
}
 0x2e6   :  { %s960_s23 = scalar_lea.hbm %s1299_s9, 16 }
 0x2e7   :  { %p961_p5 = scmp.ne.s32.totalorder %s1299_s9, %s960_s23  ;;  %p964_p6 = scmp.lt.u32.totalorder %s960_s23, %s1299_s9 }
 0x2e9   :  { %p966_p7 = pnand %p964_p6, %p961_p5 }
 0x2eb   :  { %969 = shalt.err (!%p966_p7)
}
 0x2ec   :  { %623 = dma.vmem_to_hbm [thread:$0]  %s621_s19, 16, %s1299_s9, [#allocation4]  }
 0x2ed   :  { %970 = dma.done.wait [#allocation4], 16  }
 0x2ee   :  { %971 = vsyncadd [#allocation4], 4294967280 }
 0x2ef   :  { %627 = vsyncpa [#allocation4], 1 }

</bundles_post_ra>
